<compile_context>
chip_gen: v5e
topology: v5e:2x2
jax: 0.10.0
libtpu: 0.0.40
codegen_flags: <defaults>
</compile_context>

<pallas_src>
import math

import jax
import jax.numpy as jnp
from jax.experimental import pallas as pl
from jax.experimental.pallas import tpu as pltpu


# Temporal tables stacked in this order; x_mark columns are [month, day, weekday, hour].
TABLE_SIZES = (("hour", 24), ("weekday", 7), ("day", 32), ("month", 13))
MARK_COL = {"hour": 3, "weekday": 2, "day": 1, "month": 0}


# ---------------------------------------------------------------------------
# Pallas kernel: one fused matmul (conv taps + temporal gather) + positional add
# ---------------------------------------------------------------------------
def data_embedding_kernel(xe_ref, we_ref, pos_ref, o_ref):
    # xe_ref : (TB, L, 3C+76) bf16  packed [conv taps | temporal multi-hot]
    # we_ref : (3C+76, D)     bf16  packed [conv weights ; stacked sinusoid tables]
    # pos_ref: (L, D)         bf16  positional embedding (shared across batch)
    # o_ref  : (TB, L, D)     f32
    TB, L, K = xe_ref.shape
    D = o_ref.shape[-1]

    xe = xe_ref[...].reshape(TB * L, K)
    # Single MXU matmul with f32 accumulation fuses the circular Conv1d (3 taps)
    # and the four fixed-embedding gathers (multi-hot selector x table).
    y = jnp.dot(xe, we_ref[...], preferred_element_type=jnp.float32)   # (TB*L, D)
    y = y.reshape(TB, L, D) + pos_ref[...].astype(jnp.float32)[None]
    o_ref[...] = y.astype(o_ref.dtype)


def _choose_batch_tile(B, L, target_rows=256):
    """Pick TB so TB*L feeds the MXU well, TB | B, and grid >= 2 steps when B >= 2."""
    tb = max(1, min(B, target_rows // max(L, 1)))
    while B % tb:
        tb -= 1
    if B // tb < 2 and B >= 2:      # keep both v7x TensorCores busy
        tb = max(1, B // 2)
        while B % tb:
            tb -= 1
    return tb


def data_embedding_pallas(operand, w_packed, pos, *, out_dtype=jnp.float32,
                          batch_tile=None):
    """operand: (B, L, 3C+76) bf16; w_packed: (3C+76, D) bf16; pos: (L, D) bf16."""
    B, L, K = operand.shape
    D = w_packed.shape[-1]
    TB = batch_tile if batch_tile is not None else _choose_batch_tile(B, L)

    # NOTE: for very long sequences add an L-tile grid axis (thread the L index
    # into the operand/pos/out index_maps); not needed at these sizes.
    return pl.pallas_call(
        data_embedding_kernel,
        out_shape=jax.ShapeDtypeStruct((B, L, D), out_dtype),
        grid_spec=pl.GridSpec(
            grid=(B // TB,),
            in_specs=[
                pl.BlockSpec((TB, L, K), lambda b: (b, 0, 0)),
                pl.BlockSpec((K, D), lambda b: (0, 0)),   # VMEM-resident across steps
                pl.BlockSpec((L, D), lambda b: (0, 0)),   # VMEM-resident across steps
            ],
            out_specs=pl.BlockSpec((TB, L, D), lambda b: (b, 0, 0)),
        ),
        compiler_params=pltpu.CompilerParams(
            dimension_semantics=("parallel",),
            vmem_limit_bytes=48 * 1024 * 1024,
        ),
    )(operand, w_packed, pos)


# ---------------------------------------------------------------------------
# Glue: deterministic params + packing of the fused operand / weight
# ---------------------------------------------------------------------------
def sinusoid_table(n, d_model):
    position = jnp.arange(n, dtype=jnp.float32)[:, None]
    div_term = jnp.exp(
        jnp.arange(0, d_model, 2, dtype=jnp.float32) * -(math.log(10000.0) / d_model)
    )
    tab = jnp.zeros((n, d_model), jnp.float32)
    tab = tab.at[:, 0::2].set(jnp.sin(position * div_term))
    tab = tab.at[:, 1::2].set(jnp.cos(position * div_term)[:, : d_model // 2])
    return tab


def make_params(key, c_in, d_model):
    # TokenEmbedding: Conv1d weight (d_model, c_in, 3), kaiming_normal fan_in / leaky_relu.
    fan_in = c_in * 3
    gain = math.sqrt(2.0 / (1.0 + 0.01 ** 2))
    std = gain / math.sqrt(fan_in)
    w = jax.random.normal(key, (d_model, c_in, 3), jnp.float32) * std
    conv_w3 = jnp.transpose(w, (2, 1, 0))  # (3, c_in, d_model): tap k -> (c_in, d_model)

    # TemporalEmbedding, embed_type='fixed', freq='h': fixed sinusoidal tables.
    tables = {name: sinusoid_table(size, d_model) for name, size in TABLE_SIZES}
    return conv_w3, tables


def pack_operands(x, x_mark, conv_w3, tables, pos, compute_dtype=jnp.bfloat16):
    """Build the fused (B, L, 3C+76) operand, (3C+76, D) weight and bf16 pos."""
    B, L, C = x.shape
    D = conv_w3.shape[-1]

    # Circular Conv1d (kernel=3, padding=1): y[t] = x[t-1]@W0 + x[t]@W1 + x[t+1]@W2 (mod L).
    x_prev = jnp.roll(x, 1, axis=1)
    x_next = jnp.roll(x, -1, axis=1)
    x3 = jnp.concatenate([x_prev, x, x_next], axis=-1)            # (B, L, 3C)

    # Stack the four fixed tables and turn the index gathers into a multi-hot
    # selector (exact 0/1 values, so bf16 storage is lossless).
    n_rows = sum(size for _, size in TABLE_SIZES)                 # 76
    tab_rows, one_hots, offset = [], [], 0
    xm = x_mark.astype(jnp.int32)
    for name, size in TABLE_SIZES:
        tab_rows.append(tables[name])
        one_hots.append(jax.nn.one_hot(xm[..., MARK_COL[name]] + offset,
                                       n_rows, dtype=compute_dtype))
        offset += size
    tab_stacked = jnp.concatenate(tab_rows, axis=0)               # (76, D)
    multihot = sum(one_hots)                                      # (B, L, 76)

    operand = jnp.concatenate([x3.astype(compute_dtype), multihot], axis=-1)
    w_packed = jnp.concatenate([conv_w3.reshape(3 * C, D), tab_stacked], axis=0)
    return operand, w_packed.astype(compute_dtype), pos.astype(compute_dtype)


# ---------------------------------------------------------------------------
# Pure-JAX reference (unfused: separate taps, gathers, positional add)
# ---------------------------------------------------------------------------
def data_embedding_ref(x, conv_w3, tables, x_mark, pos):
    x_prev = jnp.roll(x, 1, axis=1)
    x_next = jnp.roll(x, -1, axis=1)
    y = (jnp.einsum("blc,cd->bld", x_prev, conv_w3[0])
         + jnp.einsum("blc,cd->bld", x, conv_w3[1])
         + jnp.einsum("blc,cd->bld", x_next, conv_w3[2]))
    xm = x_mark.astype(jnp.int32)
    temporal = (tables["hour"][xm[..., 3]] + tables["weekday"][xm[..., 2]]
                + tables["day"][xm[..., 1]] + tables["month"][xm[..., 0]])
    return y + temporal + pos[None]


if __name__ == "__main__":
    B, L, C_IN, D_MODEL = 2, 8, 4, 128   # d_model=128 keeps the output lane-dense

    key = jax.random.PRNGKey(0)
    k_w, k_x, k_m, k_d, k_wd, k_h = jax.random.split(key, 6)

    conv_w3, tables = make_params(k_w, C_IN, D_MODEL)
    x = jax.random.normal(k_x, (B, L, C_IN), jnp.float32)
    x_mark = jnp.stack(
        [
            jax.random.randint(k_m, (B, L), 0, 13),   # month
            jax.random.randint(k_d, (B, L), 0, 32),   # day
            jax.random.randint(k_wd, (B, L), 0, 7),   # weekday
            jax.random.randint(k_h, (B, L), 0, 24),   # hour
        ],
        axis=-1,
    ).astype(jnp.int32)
    pos = sinusoid_table(5000, D_MODEL)[:L]           # PositionalEmbedding slice

    # TODO(synk): dropout(p=0.1) is a no-op in eval/inference mode; not applied here.
    operand, w_packed, pos_b = pack_operands(x, x_mark, conv_w3, tables, pos)
    out = data_embedding_pallas(operand, w_packed, pos_b)
    out = jax.block_until_ready(out)

    # Reference computed from the same bf16-rounded params/inputs (isolates kernel
    # + packing correctness from the intentional bf16 storage choice).
    f32 = lambda a: a.astype(jnp.bfloat16).astype(jnp.float32)
    ref = data_embedding_ref(
        f32(x), f32(conv_w3), {k: f32(v) for k, v in tables.items()}, x_mark, f32(pos)
    )

    assert out.shape == (B, L, D_MODEL)
    err = float(jnp.max(jnp.abs(out - ref)))
    assert err < 1e-3, f"Pallas kernel mismatch vs reference: {err}"
    print("KERNEL_OK")
</pallas_src>

<mosaic_0001>
module attributes {stable_mosaic.version = 11 : i64} {
  func.func @data_embedding_kernel(%arg0: i32, %arg1: memref<1x8x88xbf16, #tpu.memory_space<vmem>>, %arg2: memref<88x128xbf16, #tpu.memory_space<vmem>>, %arg3: memref<8x128xbf16, #tpu.memory_space<vmem>>, %arg4: memref<1x8x128xf32, #tpu.memory_space<vmem>>) attributes {dimension_semantics = [#tpu.dimension_semantics<parallel>], iteration_bounds = array<i64: 2>, scalar_prefetch = 0 : i64, scratch_operands = 0 : i64, tpu.core_type = #tpu.core_type<tc>, window_params = [{transform_indices = @transform_0, window_bounds = array<i64: 1, 8, 88>}, {pipeline_mode = #tpu.pipeline_mode<synchronous>, transform_indices = @transform_1, window_bounds = array<i64: 88, 128>}, {pipeline_mode = #tpu.pipeline_mode<synchronous>, transform_indices = @transform_2, window_bounds = array<i64: 8, 128>}, {transform_indices = @transform_3, window_bounds = array<i64: 1, 8, 128>}]} {
    %c0 = arith.constant 0 : index
    %c0_0 = arith.constant 0 : index
    %c0_1 = arith.constant 0 : index
    %0 = vector.load %arg1[%c0, %c0_0, %c0_1] : memref<1x8x88xbf16, #tpu.memory_space<vmem>>, vector<1x8x88xbf16>
    %1 = vector.shape_cast %0 : vector<1x8x88xbf16> to vector<8x88xbf16>
    %c0_2 = arith.constant 0 : index
    %c0_3 = arith.constant 0 : index
    %2 = vector.load %arg2[%c0_2, %c0_3] : memref<88x128xbf16, #tpu.memory_space<vmem>>, vector<88x128xbf16>
    %cst = arith.constant dense<0.000000e+00> : vector<8x128xf32>
    %3 = tpu.matmul %1, %2, %cst {dimension_numbers = #tpu.dot_dimension_numbers<[1], [0], [0], [1], [0, 0, 1, 1], [], []>} : vector<8x88xbf16>, vector<88x128xbf16>, vector<8x128xf32> -> vector<8x128xf32>
    %4 = vector.shape_cast %3 : vector<8x128xf32> to vector<1x8x128xf32>
    %c0_4 = arith.constant 0 : index
    %c0_5 = arith.constant 0 : index
    %5 = vector.load %arg3[%c0_4, %c0_5] : memref<8x128xbf16, #tpu.memory_space<vmem>>, vector<8x128xbf16>
    %6 = arith.extf %5 : vector<8x128xbf16> to vector<8x128xf32>
    %7 = vector.shape_cast %6 : vector<8x128xf32> to vector<1x8x128xf32>
    %8 = arith.addf %4, %7 : vector<1x8x128xf32>
    %c0_6 = arith.constant 0 : index
    %c0_7 = arith.constant 0 : index
    %c0_8 = arith.constant 0 : index
    %9 = vector.load %arg4[%c0_6, %c0_7, %c0_8] : memref<1x8x128xf32, #tpu.memory_space<vmem>>, vector<1x8x128xf32>
    tpu.vector_store %arg4[%c0_6, %c0_7, %c0_8], %8 {strides = array<i32>} : memref<1x8x128xf32, #tpu.memory_space<vmem>>, vector<1x8x128xf32>,
    return
  }
  func.func @transform_0(%arg0: i32) -> (i32, i32, i32) {
    %c0_i32 = arith.constant 0 : i32
    %c0_i32_0 = arith.constant 0 : i32
    %c0_i32_1 = arith.constant 0 : i32
    return %arg0, %c0_i32, %c0_i32_0 : i32, i32, i32
  }
  func.func @transform_1(%arg0: i32) -> (i32, i32) {
    %c0_i32 = arith.constant 0 : i32
    %c0_i32_0 = arith.constant 0 : i32
    %c0_i32_1 = arith.constant 0 : i32
    return %c0_i32, %c0_i32_0 : i32, i32
  }
  func.func @transform_2(%arg0: i32) -> (i32, i32) {
    %c0_i32 = arith.constant 0 : i32
    %c0_i32_0 = arith.constant 0 : i32
    %c0_i32_1 = arith.constant 0 : i32
    return %c0_i32, %c0_i32_0 : i32, i32
  }
  func.func @transform_3(%arg0: i32) -> (i32, i32, i32) {
    %c0_i32 = arith.constant 0 : i32
    %c0_i32_0 = arith.constant 0 : i32
    %c0_i32_1 = arith.constant 0 : i32
    return %arg0, %c0_i32, %c0_i32_0 : i32, i32, i32
  }
}

</mosaic_0001>

<bundles_post_ra>
// kernel: tpu_custom_call.1
= control target key start
LH: loop header
LB: loop body
LE: loop exit
PB: predicated region body
PF: predicated region fallthrough
CT: control target
= control target key end

     0   :  { %8 = vsyncpa [#allocation3], 0  ;;  %s838_s0 = inlined_call_operand.hbm [shape: bf16[2,8,88], index: 0, kind: input, shape index: {}]   ;;  %s839_s1 = inlined_call_operand.hbm [shape: bf16[88,128], index: 1, kind: input, shape index: {}]   ;;  %s840_s2 = inlined_call_operand.hbm [shape: bf16[8,128], index: 2, kind: input, shape index: {}]   ;;  %s841_s3 = inlined_call_operand.hbm [shape: f32[2,8,128], index: 3, kind: output, shape index: {}]  }
   0x1   :  { %10 = vsyncpa [#allocation3 + $0x1], 0 }
   0x2   :  { %11 = vsyncpa [#allocation6], 0 }
   0x3   :  { %12 = vsyncpa [#allocation4], 0 }
   0x4   :  { %14 = vsyncpa [#allocation4 + $0x1], 0  ;;  %s692_s12 = smov 0   ;;  %s694_s13 = smov 0  }
   0x5   :  { %s696_s14 = smov 0   ;;  %s698_s15 = smov 0  }
   0x6 LB: > { %s130_s18 = sshll.u32 %s839_s1, 4  ;;  %s716_s19 = sadd.s32 4294967295, %s666_s15   ;;  %s666_s15 = sphi %s698_s15, %s852_s15   ;;  %s662_s14 = sphi %s696_s14, %s851_s14   ;;  %s658_s13 = sphi %s694_s13, %s850_s13   ;;  %s654_s12 = sphi %s692_s12, %s849_s12   ;;  %s131_s18 = int_to_ptr.hbm [resolvable:$true] %s130_s18 }
   0x7   : > { %p396_p0 = scmp.ge.s32.totalorder %s666_s15, 1  ;;  %p41_p1 = scmp.eq.s32.totalorder %s716_s19, 0 }
   0x8   : > { %p119_p2 = scmp.lt.s32.totalorder %s666_s15, 3  ;;  %s668_s21 = smov [#allocation5]  }
   0x9   : > { %s132_s22 = sshll.u32 %s668_s21, 4  ;;  %s145_s25 = sshll.u32 %s840_s2, 4  ;;  %s133_s22 = int_to_ptr.vmem [resolvable:$true] %s132_s22  ;;  %s146_s25 = int_to_ptr.hbm [resolvable:$true] %s145_s25 }
   0xa   : > { %p721_p3 = pnand %p396_p0, %p119_p2  ;;  %s669_s26 = smov [#allocation7]  }
   0xb   : > { %s147_s27 = sshll.u32 %s669_s26, 4  ;;  %s670_s28 = smov 64   ;;  %s148_s27 = int_to_ptr.vmem [resolvable:$true] %s147_s27 }
   0xc   : > { %p449_p4 = pneg %p721_p3  ;;  %s671_s29 = smov 4  }
   0xd   : > { %s395_s30 = sadd.s32 4294967294, %s666_s15   ;;  %s735_s4 = sadd.s32 1, %s666_s15  }
   0xe   : > { %p450_p6 = pnand %p449_p4, %p41_p1  ;;  %s24_s5 = ssub.s32 %s666_s15, %s735_s4 }
   0xf   : > { %s27_s6 = sadd.s32 1, %s662_s14  ;;  %p25_p7 = scmp.eq.s32.totalorder %s24_s5, 0 }
  0x10   : > { %452 = dma.hbm_to_vmem [thread:$0]  (!%p450_p6), %s131_s18, 704, %s133_s22, [#allocation6], %s670_s28, %s670_s28, %s671_s29  }
  0x11   : > { %455 = dma.hbm_to_vmem [thread:$0]  (!%p450_p6), %s146_s25, 64, %s148_s27, [#allocation6]  }
  0x12   : > { %p34_p8 = scmp.ne.s32.totalorder %s662_s14, %s658_s13  ;;  %p35_p9 = scmp.eq.s32.totalorder %s666_s15, 0 }
  0x13   : > { %p40_p10 = scmp.ne.s32.totalorder %s658_s13, %s654_s12  ;;  %p106_p13 = scmp.eq.s32.totalorder %s716_s19, 1 }
  0x14   : > { %s746_s7 = scalar_select %p25_p7, %s662_s14, %s27_s6  }
  0x15   : > { %p748_p11 = por %p35_p9, %p34_p8  ;;  %p754_p12 = por %p41_p1, %p40_p10 }
  0x16   : > { %p112_p0 = scmp.eq.s32.totalorder %s395_s30, 1  ;;  %p466_p2 = scmp.lt.s32.totalorder %s666_s15, 2 }
  0x17   : > { %s158_s10 = sand.u32 1, %s662_s14   ;;  %p761_p4 = por %p106_p13, %p34_p8 }
  0x18   : > { %p765_p6 = por %p112_p0, %p40_p10  ;;  %s400_s17 = sshll.u32 %s158_s10, 2 }
  0x19   : > { %s401_s18 = sshll.u32 %s666_s15, 2  ;;  %s162_s24 = scalar_lea.vmem [#allocation2], %s400_s17 }
  0x1a   : > { %s166_s23 = scalar_lea.hbm %s838_s0, %s401_s18  ;;  %s170_s25 = sshll.u32 %s162_s24, 4  ;;  %s171_s25 = int_to_ptr.vmem [resolvable:$true] %s170_s25 }
  0x1b   : > { %s168_s26 = sshll.u32 %s166_s23, 4  ;;  %p775_p7 = pnand %p466_p2, %p748_p11  ;;  %s169_s26 = int_to_ptr.hbm [resolvable:$true] %s168_s26 }
  0x1c   : > { %s159_s28 = scalar_lea.sflag [#allocation3], %s158_s10  ;;  %s566_s29 = sshra.s32 %s169_s26, 4  ;;  %s567_s29 = int_to_ptr.hbm [resolvable:$true] %s566_s29 }
  0x1d   : > { %s568_s30 = scalar_lea.hbm %s567_s29, 4  ;;  %p570_p9 = pneg %p775_p7 }
  0x1e   : > { %p569_p8 = scmp.ne.s32.totalorder %s567_s29, %s568_s30  ;;  %s573_s17 = scalar_lea.hbm %s838_s0, 8 }
  0x1f   : > { %p574_p11 = scmp.lt.s32.totalorder %s567_s29, %s838_s0  ;;  %p575_p0 = scmp.lt.s32.totalorder %s573_s17, %s568_s30 }
  0x20   : > { %p571_p10 = pnand %p570_p9, %p569_p8 }
  0x21   : > { %p576_p2 = por %p575_p0, %p574_p11 }
  0x22   : > { %p572_p13 = pneg %p571_p10 }
  0x24   : > { %p577_p5 = pnand %p576_p2, %p572_p13 }
  0x26   : > { %580 = shalt.err (!%p577_p5)
}
  0x27   : > { %459 = dma.hbm_to_vmem [thread:$0]  (!%p775_p7), %s169_s26, 64, %s171_s25, %s159_s28  }
  0x28   : > { %179 = sbr.rel (%p721_p3) target bundleno = 211 (0xd3), region = 32  ;;  %s792_s10 = sand.u32 (!%p721_p3), 1, %s658_s13  }
  0x29   : > { %s403_s21 = sshll.u32 (!%p721_p3), %s792_s10, 2  ;;  %s182_s22 = scalar_lea.sflag (!%p721_p3), [#allocation3], %s792_s10 }
  0x2a   : > { %s185_s23 = scalar_lea.vmem (!%p721_p3), [#allocation2], %s403_s21 }
  0x2d   : > { %641 = dma.done.wait (%p754_p12), %s182_s22, 64  }
  0x2e   : > { %643 = vsyncadd (%p754_p12), %s182_s22, 4294967232 }
  0x2f   : > { %645 = dma.done.wait (%p41_p1), [#allocation6], 768  }
  0x30   : > { %647 = vsyncadd (%p41_p1), [#allocation6], 4294966528  ;;  %v231_v0 = vld [vmem:[#allocation5 + $0x28] sm:$0xf]  ;;  %vm269_vm0 = vcmask 1043456   ;;  %v436_v4 = vld [vmem:[#allocation5 + $0x20] sm:$0xff] }
  0x31   : > { %v253_v1 = vunpack.c.l.b16 %v231_v0  ;;  %v435_v5 = vld [vmem:[#allocation5 + $0x18] sm:$0xff]  ;;  %v434_v6 = vld [vmem:[#allocation5 + $0x10] sm:$0xff]  ;;  %v433_v7 = vld [vmem:[#allocation5 + $0x8] sm:$0xff]  ;;  %vm265_vm1 = vcmask 719872   ;;  %s429_s20 = sshll.u32 %s716_s19, 3  ;;  %s406_s9 = sshll.u32 %s792_s10, 3 }
  0x32   : > { %v432_v8 = vld [vmem:[#allocation5] sm:$0xff]  ;;  %v220_v9 = vld [vmem:[%s185_s23] sm:$0xf]  ;;  %v286_v10 = vld [vmem:[#allocation7] sm:$0xf]  ;;  %s301_s26 = scalar_lea.hbm %s841_s3, %s429_s20  ;;  %s218_s27 = scalar_lea.vmem [#allocation8], %s406_s9 }
  0x33   : > { %v259_v2 = vpack.c.b16 %v253_v1, %v253_v1  ;;  %v287_v11 = vunpack.c.l.bf16 %v286_v10  ;;  %s303_s28 = sshll.u32 %s218_s27, 4  ;;  %s305_s29 = sshll.u32 %s301_s26, 4  ;;  %s304_s28 = int_to_ptr.vmem [resolvable:$true] %s303_s28  ;;  %s306_s29 = int_to_ptr.hbm [resolvable:$true] %s305_s29 }
  0x34   : > { %s291_s30 = scalar_lea.sflag [#allocation4], %s792_s10  ;;  %s610_s5 = sshra.s32 %s306_s29, 4  ;;  %s611_s5 = int_to_ptr.hbm [resolvable:$true] %s610_s5 }
  0x35   : > { %v271_v3 = vsel %vm269_vm0, %v259_v2, 0  ;;  %s612_s19 = scalar_lea.hbm %s611_s5, 8  ;;  %s616_s18 = scalar_lea.hbm %s841_s3, 16 }
  0x36   : > { %275 = vmatpush.bf16.msra.mxu0 %v271_v3  ;;  %p613_p1 = scmp.ne.s32.totalorder %s611_s5, %s612_s19  ;;  %p617_p12 = scmp.lt.s32.totalorder %s611_s5, %s841_s3 }
  0x37   : > { %p618_p7 = scmp.lt.s32.totalorder %s616_s18, %s612_s19 }
  0x38   : > { %p614_p3 = pnand %p613_p1, %p761_p4 }
  0x39   : > { %p619_p8 = por %p618_p7, %p617_p12 }
  0x3a   : > { %276 = vmatpush.bf16.msra.mxu0 %v436_v4  ;;  %p615_p5 = pneg %p614_p3 }
  0x3c   : > { %p620_p9 = pnand %p619_p8, %p615_p5 }
  0x3e   : > { %277 = vmatpush.bf16.msra.mxu0 %v435_v5 }
  0x42   : > { %278 = vmatpush.bf16.msra.mxu0 %v434_v6 }
  0x46   : > { %279 = vmatpush.bf16.msra.mxu0 %v433_v7 }
  0x4a   : > { %280 = vmatpush.bf16.msra.mxu0 %v432_v8 }
  0x4d   : > { %427 = vmatmul.msk.bf16.vlgmr.msra.gmra.mxu0 %vm265_vm1, %v220_v9 }
  0xca   : > { %v282_v12 = vpop.f32.mrf.mxu0 }
  0xcb   : > { %v288_v13 = vadd.f32 %v287_v11, %v282_v12 }
  0xcd   : > { %289 = vst [vmem:[%s218_s27] sm:$0xff] %v288_v13 }
  0xce   : > { %623 = shalt.err (!%p620_p9)
}
  0xcf   : > { %447 = dma.vmem_to_hbm [thread:$0]  (%p761_p4), %s304_s28, 128, %s306_s29, %s291_s30  }
  0xd2   : > { %v284_v14 = vpop.f32.mrf.mxu0 }
  0xd3 PF: > { %s317_s10 = sand.u32 1, %s654_s12   ;;  %p848_p10 = scmp.ge.s32.totalorder %s666_s15, 2 }
  0xd4   : > { %s318_s22 = scalar_lea.sflag [#allocation4], %s317_s10 }
  0xd5   : > { %p461_p13 = pnand %p848_p10, %p765_p6 }
  0xd7   : > { %p462_p11 = pneg %p461_p13 }
  0xd9   : > { %649 = dma.done.wait (%p462_p11), %s318_s22, 128  }
  0xda   : > { %651 = vsyncadd (%p462_p11), %s318_s22, 4294967168  ;;  %p17_p0 = scmp.ge.s32.totalorder %s735_s4, 4   ;;  %s849_s12 = smov %s658_s13 }
  0xdb   : > { %s850_s13 = smov %s662_s14  ;;  %s851_s14 = smov %s746_s7 }
  0xdc   : > { %s852_s15 = smov %s735_s4  ;;  %19 = sbr.rel (!%p17_p0) target bundleno = 6 (0x6), region = 85 }
  0xe1   :  { %324 = vsyncpa [#allocation3], 1 }
  0xe2   :  { %326 = vsyncpa [#allocation3 + $0x1], 1 }
  0xe3   :  { %327 = vsyncpa [#allocation6], 1 }
  0xe4   :  { %328 = vsyncpa [#allocation4], 1 }
  0xe5   :  { %330 = vsyncpa [#allocation4 + $0x1], 1 }

</bundles_post_ra>
